<compile_context>
chip_gen: v6e
topology: v6e:2x2x1
jax: 0.10.0
libtpu: 0.0.40
codegen_flags: <defaults>
</compile_context>

<pallas_src>
import functools

import jax
import jax.numpy as jnp
from jax.experimental import pallas as pl
from jax.experimental.pallas import tpu as pltpu


def _chamfer_kernel(x_ref, yt_ref, o_ref, *rowmin_refs, ny_true, ny_pad):
    # x_ref       : (BB, Nx, D)   gts batch-block       (gts points on sublanes)
    # yt_ref      : (BB, D, Tny)  preds.T batch-block, one Ny tile (preds on lanes)
    # o_ref       : (1, 128)      this batch-block's loss, broadcast across lanes
    # rowmin_refs : BB x (Nx, 128) running per-128-lane-block min_j over Ny tiles
    t = pl.program_id(1)
    bb, nx, d = x_ref.shape
    tny = yt_ref.shape[2]
    nblk = tny // 128            # Tny is always a multiple of 128 (wrapper pads)

    @pl.when(t == 0)
    def _init():
        o_ref[...] = jnp.zeros_like(o_ref)
        for r in rowmin_refs:
            r[...] = jnp.full(r.shape, jnp.inf, dtype=r.dtype)

    need_mask = ny_pad != ny_true          # trace-time decision
    if need_mask:
        col = t * tny + jax.lax.broadcasted_iota(jnp.int32, (1, tny), 1)
        valid = col < ny_true              # (1, Tny), hoisted out of the bb loop

    total = 0.0
    for i in range(bb):
        x = x_ref[i].astype(jnp.float32)        # (Nx, D)
        yt = yt_ref[i].astype(jnp.float32)      # (D, Tny)

        xx = jnp.sum(x * x, axis=1, keepdims=True)      # (Nx, 1)  column
        yy = jnp.sum(yt * yt, axis=0, keepdims=True)    # (1, Tny) row

        # Single fused build of P = xx + yy - 2 <x, y>: broadcast add then D
        # rank-1 VPU updates; the -2 is folded into the cheap (Nx, 1) column.
        p = xx + yy
        for k in range(d):
            p = p + (-2.0 * x[:, k:k + 1]) * yt[k:k + 1, :]

        # loss_1 contribution of this tile: sum over *valid* columns of min_i P.
        colmin = jnp.min(p, axis=0, keepdims=True)       # (1, Tny)
        if need_mask:
            colmin = jnp.where(valid, colmin, 0.0)
        total = total + jnp.sum(colmin)

        # loss_2: deferred cross-lane reduce -> per-128-lane-block running min
        # (pure VPU); the single XLU reduce happens once, in the finalize.
        m = p[:, 0:128]
        for blk in range(1, nblk):
            m = jnp.minimum(m, p[:, blk * 128:(blk + 1) * 128])
        rowmin_refs[i][...] = jnp.minimum(rowmin_refs[i][...], m)

    o_ref[...] += total

    @pl.when(t == pl.num_programs(1) - 1)
    def _finalize():
        fin = 0.0
        for i in range(bb):
            fin = fin + jnp.sum(
                jnp.min(rowmin_refs[i][...], axis=1, keepdims=True))
        o_ref[...] += fin


def _pick_ny_tile(nx, ny_pad, max_tile_elems):
    """Largest Ny tile that is a multiple of 128, divides ny_pad, and keeps
    the per-tile (Nx, tile) f32 distance matrix within the element budget."""
    cap = min(ny_pad, max(128, (max_tile_elems // max(nx, 1)) // 128 * 128))
    for tcand in range(cap, 127, -128):
        if ny_pad % tcand == 0:
            return tcand
    return 128


def _pick_batch_block(b, nx, tny, max_tile_elems, cap=8):
    """Largest divisor of B (<= cap) whose combined batch-block tile work stays
    within ~2x the single-cloud budget: amortizes the ~0.35us/step overhead for
    tiny clouds and gives v7x megacore more than one parallel step."""
    for c in range(min(b, cap), 0, -1):
        if b % c == 0 and c * nx * tny <= 2 * max_tile_elems:
            return c
    return 1


def chamfer_loss(preds, gts, *, max_tile_elems=1 << 18):
    """Matches ChamferLoss.forward(preds, gts): P = pairwise_dist(gts, preds)."""
    B, Nx, D = gts.shape
    Bp, Ny, Dp = preds.shape
    assert B == Bp and D == Dp

    # Lane-dense layout for the large tensor: (B, D, Ny); pad Ny up to a
    # multiple of 128 by edge-replicating the last (real) point so padded
    # columns can never change a min_j; they are masked out of the loss_1 sum.
    # TODO(synk): fuse this transpose into the producer of preds for very large
    # clouds (it is the dominant HBM cost of the end-to-end op).
    preds_t = jnp.swapaxes(preds, 1, 2)
    ny_pad = ((Ny + 127) // 128) * 128
    if ny_pad != Ny:
        preds_t = jnp.pad(preds_t, ((0, 0), (0, 0), (0, ny_pad - Ny)),
                          mode="edge")

    tny = _pick_ny_tile(Nx, ny_pad, max_tile_elems)
    n_tiles = ny_pad // tny
    bb = _pick_batch_block(B, Nx, tny, max_tile_elems)

    # Rough peak VMEM estimate (bytes): ~3 live f32 (Nx,Tny) temporaries per
    # unrolled batch-block chain + double-buffered input blocks + scratch.
    est_bytes = 4 * (3 * bb * Nx * tny
                     + 2 * bb * (Nx * D + D * tny)
                     + bb * Nx * 128 + 128)
    # TODO(synk): add Nx tiling (per-column running-min scratch) so very large
    # gts clouds (Nx >~ 16K) fit v7x's 64 MiB VMEM instead of asserting here.
    assert est_bytes <= 48 * 1024 * 1024, (
        f"ChamferLoss kernel VMEM estimate {est_bytes} B too large for v7x; "
        f"reduce max_tile_elems or add Nx tiling (Nx={Nx}, Tny={tny}, BB={bb}).")
    vmem_limit = int(min(64 * 1024 * 1024, max(4 * est_bytes, 32 * 1024 * 1024)))

    kernel = functools.partial(_chamfer_kernel, ny_true=Ny, ny_pad=ny_pad)

    out = pl.pallas_call(
        kernel,
        out_shape=jax.ShapeDtypeStruct((B // bb, 1, 128), jnp.float32),
        grid_spec=pltpu.PrefetchScalarGridSpec(
            num_scalar_prefetch=0,
            grid=(B // bb, n_tiles),                               # Ny tiles innermost
            in_specs=[
                pl.BlockSpec((bb, Nx, D), lambda b, t: (b, 0, 0)),    # gts block
                pl.BlockSpec((bb, D, tny), lambda b, t: (b, 0, t)),   # preds.T tile
            ],
            out_specs=pl.BlockSpec((None, 1, 128), lambda b, t: (b, 0, 0)),
            scratch_shapes=[pltpu.VMEM((Nx, 128), jnp.float32)
                            for _ in range(bb)],
        ),
        compiler_params=pltpu.CompilerParams(
            dimension_semantics=("parallel", "arbitrary"),         # batch axis parallel
            vmem_limit_bytes=vmem_limit,
        ),
    )(gts, preds_t)

    # Every lane of a batch-block row holds that block's loss; take lane 0, sum.
    return jnp.sum(out[:, 0, 0])


def _chamfer_ref(preds, gts):
    # Pure-JAX reference mirroring the PyTorch module exactly.
    x, y = gts.astype(jnp.float32), preds.astype(jnp.float32)
    xx = jnp.sum(x ** 2, axis=2, keepdims=True)
    yy = jnp.sum(y ** 2, axis=2, keepdims=True)
    xy = -2.0 * jnp.einsum("bnd,bmd->bnm", x, y, precision="highest")
    P = xy + xx + jnp.swapaxes(yy, 1, 2)
    loss_1 = jnp.sum(jnp.min(P, axis=1))
    loss_2 = jnp.sum(jnp.min(P, axis=2))
    return loss_1 + loss_2


if __name__ == "__main__":
    key = jax.random.PRNGKey(0)

    def run_case(bs, nx, ny, d, **kw):
        k1, k2 = jax.random.split(
            jax.random.fold_in(key, bs * 100003 + nx * 1000 + ny))
        preds = jax.random.normal(k1, (bs, ny, d), dtype=jnp.float32)
        gts = jax.random.normal(k2, (bs, nx, d), dtype=jnp.float32)
        got = jax.block_until_ready(chamfer_loss(preds, gts, **kw))
        want = jax.block_until_ready(_chamfer_ref(preds, gts))
        assert jnp.allclose(got, want, rtol=1e-4, atol=1e-3), (
            bs, nx, ny, got, want)

    # Tiny clouds: Ny padded 16 -> 128, batch-blocked (BB=2), masked loss_1.
    run_case(2, 16, 16, 3)
    # Ragged Nx and ragged Ny (100 x 72 -> pad 128): padding must never win.
    run_case(2, 100, 72, 3)
    # Forced Ny tiling (2 tiles of 128) with batch blocking: running row-min.
    run_case(2, 64, 256, 3, max_tile_elems=64 * 128)
    # Odd batch (BB=3), Ny=200 -> pad 256 in one tile: two 128-lane-block mins.
    run_case(3, 32, 200, 3)
    # B = 1 (single parallel step), ragged everything.
    run_case(1, 40, 130, 3)

    print("KERNEL_OK")
</pallas_src>

<mosaic_0001>
module attributes {stable_mosaic.version = 11 : i64} {
  func.func @_chamfer_kernel(%arg0: i32, %arg1: i32, %arg2: memref<2x16x3xf32, #tpu.memory_space<vmem>>, %arg3: memref<2x3x128xf32, #tpu.memory_space<vmem>>, %arg4: memref<1x1x128xf32, #tpu.memory_space<vmem>>, %arg5: memref<16x128xf32, #tpu.memory_space<vmem>>, %arg6: memref<16x128xf32, #tpu.memory_space<vmem>>) attributes {dimension_semantics = [#tpu.dimension_semantics<parallel>, #tpu.dimension_semantics<arbitrary>], iteration_bounds = array<i64: 1, 1>, scalar_prefetch = 0 : i64, scratch_operands = 2 : i64, tpu.core_type = #tpu.core_type<tc>, window_params = [{transform_indices = @transform_0, window_bounds = array<i64: 2, 16, 3>}, {transform_indices = @transform_1, window_bounds = array<i64: 2, 3, 128>}, {transform_indices = @transform_2, window_bounds = array<i64: 1, 1, 128>}]} {
    %c0_i32 = arith.constant 0 : i32
    %0 = arith.cmpi eq, %arg1, %c0_i32 : i32
    %1 = arith.extui %0 : i1 to i32
    %c0_i32_0 = arith.constant 0 : i32
    %2 = arith.cmpi ne, %1, %c0_i32_0 : i32
    scf.if %2 {
      %cst_43 = arith.constant 0.000000e+00 : f32
      %117 = vector.broadcast %cst_43 : f32 to vector<1x128xf32>
      %c0_44 = arith.constant 0 : index
      %c0_45 = arith.constant 0 : index
      %c0_46 = arith.constant 0 : index
      %118 = vector.load %arg4[%c0_44, %c0_45, %c0_46] : memref<1x1x128xf32, #tpu.memory_space<vmem>>, vector<1x1x128xf32>
      %119 = vector.shape_cast %118 : vector<1x1x128xf32> to vector<1x128xf32>
      %120 = vector.shape_cast %117 : vector<1x128xf32> to vector<1x1x128xf32>
      tpu.vector_store %arg4[%c0_44, %c0_45, %c0_46], %120 {strides = array<i32>} : memref<1x1x128xf32, #tpu.memory_space<vmem>>, vector<1x1x128xf32>,
      %cst_47 = arith.constant 0x7F800000 : f32
      %121 = vector.broadcast %cst_47 : f32 to vector<16x128xf32>
      %c0_48 = arith.constant 0 : index
      %c0_49 = arith.constant 0 : index
      %122 = vector.load %arg5[%c0_48, %c0_49] : memref<16x128xf32, #tpu.memory_space<vmem>>, vector<16x128xf32>
      tpu.vector_store %arg5[%c0_48, %c0_49], %121 {strides = array<i32>} : memref<16x128xf32, #tpu.memory_space<vmem>>, vector<16x128xf32>,
      %cst_50 = arith.constant 0x7F800000 : f32
      %123 = vector.broadcast %cst_50 : f32 to vector<16x128xf32>
      %c0_51 = arith.constant 0 : index
      %c0_52 = arith.constant 0 : index
      %124 = vector.load %arg6[%c0_51, %c0_52] : memref<16x128xf32, #tpu.memory_space<vmem>>, vector<16x128xf32>
      tpu.vector_store %arg6[%c0_51, %c0_52], %123 {strides = array<i32>} : memref<16x128xf32, #tpu.memory_space<vmem>>, vector<16x128xf32>,
    } else {
    }
    %c128_i32 = arith.constant 128 : i32
    %3 = arith.muli %arg1, %c128_i32 : i32
    %4 = tpu.iota {dimensions = array<i32: 1>} : vector<1x128xi32>
    %5 = vector.broadcast %3 : i32 to vector<1x128xi32>
    %6 = arith.addi %5, %4 : vector<1x128xi32>
    %c16_i32 = arith.constant 16 : i32
    %7 = vector.broadcast %c16_i32 : i32 to vector<1x128xi32>
    %8 = arith.cmpi slt, %6, %7 : vector<1x128xi32>
    %c0 = arith.constant 0 : index
    %c0_1 = arith.constant 0 : index
    %c0_2 = arith.constant 0 : index
    %9 = vector.load %arg2[%c0, %c0_1, %c0_2] : memref<2x16x3xf32, #tpu.memory_space<vmem>>, vector<1x16x3xf32>
    %10 = vector.shape_cast %9 : vector<1x16x3xf32> to vector<16x3xf32>
    %c0_3 = arith.constant 0 : index
    %c0_4 = arith.constant 0 : index
    %c0_5 = arith.constant 0 : index
    %11 = vector.load %arg3[%c0_3, %c0_4, %c0_5] : memref<2x3x128xf32, #tpu.memory_space<vmem>>, vector<1x3x128xf32>
    %12 = vector.shape_cast %11 : vector<1x3x128xf32> to vector<3x128xf32>
    %13 = arith.mulf %10, %10 : vector<16x3xf32>
    %cst = arith.constant dense<0.000000e+00> : vector<16xf32>
    %14 = vector.multi_reduction <add>, %13, %cst [1] : vector<16x3xf32> to vector<16xf32>
    %15 = vector.shape_cast %14 : vector<16xf32> to vector<16x1xf32>
    %16 = arith.mulf %12, %12 : vector<3x128xf32>
    %cst_6 = arith.constant dense<0.000000e+00> : vector<128xf32>
    %17 = vector.multi_reduction <add>, %16, %cst_6 [0] : vector<3x128xf32> to vector<128xf32>
    %18 = vector.shape_cast %17 : vector<128xf32> to vector<1x128xf32>
    %19 = vector.broadcast %15 : vector<16x1xf32> to vector<16x128xf32>
    %20 = vector.broadcast %18 : vector<1x128xf32> to vector<16x128xf32>
    %21 = arith.addf %19, %20 : vector<16x128xf32>
    %22 = vector.extract_strided_slice %10 {offsets = [0, 0], sizes = [16, 1], strides = [1, 1]} : vector<16x3xf32> to vector<16x1xf32>
    %cst_7 = arith.constant -2.000000e+00 : f32
    %23 = vector.broadcast %cst_7 : f32 to vector<16x1xf32>
    %24 = arith.mulf %23, %22 : vector<16x1xf32>
    %25 = vector.extract_strided_slice %12 {offsets = [0, 0], sizes = [1, 128], strides = [1, 1]} : vector<3x128xf32> to vector<1x128xf32>
    %26 = vector.broadcast %24 : vector<16x1xf32> to vector<16x128xf32>
    %27 = vector.broadcast %25 : vector<1x128xf32> to vector<16x128xf32>
    %28 = arith.mulf %26, %27 : vector<16x128xf32>
    %29 = arith.addf %21, %28 : vector<16x128xf32>
    %30 = vector.extract_strided_slice %10 {offsets = [0, 1], sizes = [16, 1], strides = [1, 1]} : vector<16x3xf32> to vector<16x1xf32>
    %cst_8 = arith.constant -2.000000e+00 : f32
    %31 = vector.broadcast %cst_8 : f32 to vector<16x1xf32>
    %32 = arith.mulf %31, %30 : vector<16x1xf32>
    %33 = vector.extract_strided_slice %12 {offsets = [1, 0], sizes = [1, 128], strides = [1, 1]} : vector<3x128xf32> to vector<1x128xf32>
    %34 = vector.broadcast %32 : vector<16x1xf32> to vector<16x128xf32>
    %35 = vector.broadcast %33 : vector<1x128xf32> to vector<16x128xf32>
    %36 = arith.mulf %34, %35 : vector<16x128xf32>
    %37 = arith.addf %29, %36 : vector<16x128xf32>
    %38 = vector.extract_strided_slice %10 {offsets = [0, 2], sizes = [16, 1], strides = [1, 1]} : vector<16x3xf32> to vector<16x1xf32>
    %cst_9 = arith.constant -2.000000e+00 : f32
    %39 = vector.broadcast %cst_9 : f32 to vector<16x1xf32>
    %40 = arith.mulf %39, %38 : vector<16x1xf32>
    %41 = vector.extract_strided_slice %12 {offsets = [2, 0], sizes = [1, 128], strides = [1, 1]} : vector<3x128xf32> to vector<1x128xf32>
    %42 = vector.broadcast %40 : vector<16x1xf32> to vector<16x128xf32>
    %43 = vector.broadcast %41 : vector<1x128xf32> to vector<16x128xf32>
    %44 = arith.mulf %42, %43 : vector<16x128xf32>
    %45 = arith.addf %37, %44 : vector<16x128xf32>
    %cst_10 = arith.constant dense<0x7F800000> : vector<128xf32>
    %46 = vector.multi_reduction <minimumf>, %45, %cst_10 [0] : vector<16x128xf32> to vector<128xf32>
    %47 = vector.shape_cast %46 : vector<128xf32> to vector<1x128xf32>
    %cst_11 = arith.constant 0.000000e+00 : f32
    %48 = vector.broadcast %cst_11 : f32 to vector<1x128xf32>
    %49 = arith.select %8, %47, %48 : vector<1x128xi1>, vector<1x128xf32>
    %50 = vector.shape_cast %49 : vector<1x128xf32> to vector<1x1x128xf32>
    %cst_12 = arith.constant dense<0.000000e+00> : vector<1xf32>
    %51 = vector.multi_reduction <add>, %50, %cst_12 [1, 2] : vector<1x1x128xf32> to vector<1xf32>
    %52 = vector.shape_cast %51 : vector<1xf32> to vector<1x1x1xf32>
    %53 = vector.extract %52[0, 0, 0] : f32 from vector<1x1x1xf32>
    %cst_13 = arith.constant 0.000000e+00 : f32
    %54 = arith.addf %cst_13, %53 : f32
    %c0_14 = arith.constant 0 : index
    %c0_15 = arith.constant 0 : index
    %55 = vector.load %arg5[%c0_14, %c0_15] : memref<16x128xf32, #tpu.memory_space<vmem>>, vector<16x128xf32>
    %56 = arith.minimumf %55, %45 : vector<16x128xf32>
    %c0_16 = arith.constant 0 : index
    %c0_17 = arith.constant 0 : index
    %57 = vector.load %arg5[%c0_16, %c0_17] : memref<16x128xf32, #tpu.memory_space<vmem>>, vector<16x128xf32>
    tpu.vector_store %arg5[%c0_16, %c0_17], %56 {strides = array<i32>} : memref<16x128xf32, #tpu.memory_space<vmem>>, vector<16x128xf32>,
    %c1 = arith.constant 1 : index
    %c0_18 = arith.constant 0 : index
    %c0_19 = arith.constant 0 : index
    %58 = vector.load %arg2[%c1, %c0_18, %c0_19] : memref<2x16x3xf32, #tpu.memory_space<vmem>>, vector<1x16x3xf32>
    %59 = vector.shape_cast %58 : vector<1x16x3xf32> to vector<16x3xf32>
    %c1_20 = arith.constant 1 : index
    %c0_21 = arith.constant 0 : index
    %c0_22 = arith.constant 0 : index
    %60 = vector.load %arg3[%c1_20, %c0_21, %c0_22] : memref<2x3x128xf32, #tpu.memory_space<vmem>>, vector<1x3x128xf32>
    %61 = vector.shape_cast %60 : vector<1x3x128xf32> to vector<3x128xf32>
    %62 = arith.mulf %59, %59 : vector<16x3xf32>
    %cst_23 = arith.constant dense<0.000000e+00> : vector<16xf32>
    %63 = vector.multi_reduction <add>, %62, %cst_23 [1] : vector<16x3xf32> to vector<16xf32>
    %64 = vector.shape_cast %63 : vector<16xf32> to vector<16x1xf32>
    %65 = arith.mulf %61, %61 : vector<3x128xf32>
    %cst_24 = arith.constant dense<0.000000e+00> : vector<128xf32>
    %66 = vector.multi_reduction <add>, %65, %cst_24 [0] : vector<3x128xf32> to vector<128xf32>
    %67 = vector.shape_cast %66 : vector<128xf32> to vector<1x128xf32>
    %68 = vector.broadcast %64 : vector<16x1xf32> to vector<16x128xf32>
    %69 = vector.broadcast %67 : vector<1x128xf32> to vector<16x128xf32>
    %70 = arith.addf %68, %69 : vector<16x128xf32>
    %71 = vector.extract_strided_slice %59 {offsets = [0, 0], sizes = [16, 1], strides = [1, 1]} : vector<16x3xf32> to vector<16x1xf32>
    %cst_25 = arith.constant -2.000000e+00 : f32
    %72 = vector.broadcast %cst_25 : f32 to vector<16x1xf32>
    %73 = arith.mulf %72, %71 : vector<16x1xf32>
    %74 = vector.extract_strided_slice %61 {offsets = [0, 0], sizes = [1, 128], strides = [1, 1]} : vector<3x128xf32> to vector<1x128xf32>
    %75 = vector.broadcast %73 : vector<16x1xf32> to vector<16x128xf32>
    %76 = vector.broadcast %74 : vector<1x128xf32> to vector<16x128xf32>
    %77 = arith.mulf %75, %76 : vector<16x128xf32>
    %78 = arith.addf %70, %77 : vector<16x128xf32>
    %79 = vector.extract_strided_slice %59 {offsets = [0, 1], sizes = [16, 1], strides = [1, 1]} : vector<16x3xf32> to vector<16x1xf32>
    %cst_26 = arith.constant -2.000000e+00 : f32
    %80 = vector.broadcast %cst_26 : f32 to vector<16x1xf32>
    %81 = arith.mulf %80, %79 : vector<16x1xf32>
    %82 = vector.extract_strided_slice %61 {offsets = [1, 0], sizes = [1, 128], strides = [1, 1]} : vector<3x128xf32> to vector<1x128xf32>
    %83 = vector.broadcast %81 : vector<16x1xf32> to vector<16x128xf32>
    %84 = vector.broadcast %82 : vector<1x128xf32> to vector<16x128xf32>
    %85 = arith.mulf %83, %84 : vector<16x128xf32>
    %86 = arith.addf %78, %85 : vector<16x128xf32>
    %87 = vector.extract_strided_slice %59 {offsets = [0, 2], sizes = [16, 1], strides = [1, 1]} : vector<16x3xf32> to vector<16x1xf32>
    %cst_27 = arith.constant -2.000000e+00 : f32
    %88 = vector.broadcast %cst_27 : f32 to vector<16x1xf32>
    %89 = arith.mulf %88, %87 : vector<16x1xf32>
    %90 = vector.extract_strided_slice %61 {offsets = [2, 0], sizes = [1, 128], strides = [1, 1]} : vector<3x128xf32> to vector<1x128xf32>
    %91 = vector.broadcast %89 : vector<16x1xf32> to vector<16x128xf32>
    %92 = vector.broadcast %90 : vector<1x128xf32> to vector<16x128xf32>
    %93 = arith.mulf %91, %92 : vector<16x128xf32>
    %94 = arith.addf %86, %93 : vector<16x128xf32>
    %cst_28 = arith.constant dense<0x7F800000> : vector<128xf32>
    %95 = vector.multi_reduction <minimumf>, %94, %cst_28 [0] : vector<16x128xf32> to vector<128xf32>
    %96 = vector.shape_cast %95 : vector<128xf32> to vector<1x128xf32>
    %cst_29 = arith.constant 0.000000e+00 : f32
    %97 = vector.broadcast %cst_29 : f32 to vector<1x128xf32>
    %98 = arith.select %8, %96, %97 : vector<1x128xi1>, vector<1x128xf32>
    %99 = vector.shape_cast %98 : vector<1x128xf32> to vector<1x1x128xf32>
    %cst_30 = arith.constant dense<0.000000e+00> : vector<1xf32>
    %100 = vector.multi_reduction <add>, %99, %cst_30 [1, 2] : vector<1x1x128xf32> to vector<1xf32>
    %101 = vector.shape_cast %100 : vector<1xf32> to vector<1x1x1xf32>
    %102 = vector.extract %101[0, 0, 0] : f32 from vector<1x1x1xf32>
    %103 = arith.addf %54, %102 : f32
    %c0_31 = arith.constant 0 : index
    %c0_32 = arith.constant 0 : index
    %104 = vector.load %arg6[%c0_31, %c0_32] : memref<16x128xf32, #tpu.memory_space<vmem>>, vector<16x128xf32>
    %105 = arith.minimumf %104, %94 : vector<16x128xf32>
    %c0_33 = arith.constant 0 : index
    %c0_34 = arith.constant 0 : index
    %106 = vector.load %arg6[%c0_33, %c0_34] : memref<16x128xf32, #tpu.memory_space<vmem>>, vector<16x128xf32>
    tpu.vector_store %arg6[%c0_33, %c0_34], %105 {strides = array<i32>} : memref<16x128xf32, #tpu.memory_space<vmem>>, vector<16x128xf32>,
    %c0_35 = arith.constant 0 : index
    %c0_36 = arith.constant 0 : index
    %c0_37 = arith.constant 0 : index
    %107 = vector.load %arg4[%c0_35, %c0_36, %c0_37] : memref<1x1x128xf32, #tpu.memory_space<vmem>>, vector<1x1x128xf32>
    %108 = vector.shape_cast %107 : vector<1x1x128xf32> to vector<1x128xf32>
    %109 = vector.broadcast %103 : f32 to vector<1x128xf32>
    %110 = arith.addf %108, %109 : vector<1x128xf32>
    %c0_38 = arith.constant 0 : index
    %c0_39 = arith.constant 0 : index
    %c0_40 = arith.constant 0 : index
    %111 = vector.load %arg4[%c0_38, %c0_39, %c0_40] : memref<1x1x128xf32, #tpu.memory_space<vmem>>, vector<1x1x128xf32>
    %112 = vector.shape_cast %111 : vector<1x1x128xf32> to vector<1x128xf32>
    %113 = vector.shape_cast %110 : vector<1x128xf32> to vector<1x1x128xf32>
    tpu.vector_store %arg4[%c0_38, %c0_39, %c0_40], %113 {strides = array<i32>} : memref<1x1x128xf32, #tpu.memory_space<vmem>>, vector<1x1x128xf32>,
    %c0_i32_41 = arith.constant 0 : i32
    %114 = arith.cmpi eq, %arg1, %c0_i32_41 : i32
    %115 = arith.extui %114 : i1 to i32
    %c0_i32_42 = arith.constant 0 : i32
    %116 = arith.cmpi ne, %115, %c0_i32_42 : i32
    scf.if %116 {
      %c0_43 = arith.constant 0 : index
      %c0_44 = arith.constant 0 : index
      %117 = vector.load %arg5[%c0_43, %c0_44] : memref<16x128xf32, #tpu.memory_space<vmem>>, vector<16x128xf32>
      %cst_45 = arith.constant dense<0x7F800000> : vector<16xf32>
      %118 = vector.multi_reduction <minimumf>, %117, %cst_45 [1] : vector<16x128xf32> to vector<16xf32>
      %119 = vector.shape_cast %118 : vector<16xf32> to vector<16x1xf32>
      %120 = vector.shape_cast %119 : vector<16x1xf32> to vector<1x16x1xf32>
      %cst_46 = arith.constant dense<0.000000e+00> : vector<1xf32>
      %121 = vector.multi_reduction <add>, %120, %cst_46 [1, 2] : vector<1x16x1xf32> to vector<1xf32>
      %122 = vector.shape_cast %121 : vector<1xf32> to vector<1x1x1xf32>
      %123 = vector.extract %122[0, 0, 0] : f32 from vector<1x1x1xf32>
      %cst_47 = arith.constant 0.000000e+00 : f32
      %124 = arith.addf %cst_47, %123 : f32
      %c0_48 = arith.constant 0 : index
      %c0_49 = arith.constant 0 : index
      %125 = vector.load %arg6[%c0_48, %c0_49] : memref<16x128xf32, #tpu.memory_space<vmem>>, vector<16x128xf32>
      %cst_50 = arith.constant dense<0x7F800000> : vector<16xf32>
      %126 = vector.multi_reduction <minimumf>, %125, %cst_50 [1] : vector<16x128xf32> to vector<16xf32>
      %127 = vector.shape_cast %126 : vector<16xf32> to vector<16x1xf32>
      %128 = vector.shape_cast %127 : vector<16x1xf32> to vector<1x16x1xf32>
      %cst_51 = arith.constant dense<0.000000e+00> : vector<1xf32>
      %129 = vector.multi_reduction <add>, %128, %cst_51 [1, 2] : vector<1x16x1xf32> to vector<1xf32>
      %130 = vector.shape_cast %129 : vector<1xf32> to vector<1x1x1xf32>
      %131 = vector.extract %130[0, 0, 0] : f32 from vector<1x1x1xf32>
      %132 = arith.addf %124, %131 : f32
      %c0_52 = arith.constant 0 : index
      %c0_53 = arith.constant 0 : index
      %c0_54 = arith.constant 0 : index
      %133 = vector.load %arg4[%c0_52, %c0_53, %c0_54] : memref<1x1x128xf32, #tpu.memory_space<vmem>>, vector<1x1x128xf32>
      %134 = vector.shape_cast %133 : vector<1x1x128xf32> to vector<1x128xf32>
      %135 = vector.broadcast %132 : f32 to vector<1x128xf32>
      %136 = arith.addf %134, %135 : vector<1x128xf32>
      %c0_55 = arith.constant 0 : index
      %c0_56 = arith.constant 0 : index
      %c0_57 = arith.constant 0 : index
      %137 = vector.load %arg4[%c0_55, %c0_56, %c0_57] : memref<1x1x128xf32, #tpu.memory_space<vmem>>, vector<1x1x128xf32>
      %138 = vector.shape_cast %137 : vector<1x1x128xf32> to vector<1x128xf32>
      %139 = vector.shape_cast %136 : vector<1x128xf32> to vector<1x1x128xf32>
      tpu.vector_store %arg4[%c0_55, %c0_56, %c0_57], %139 {strides = array<i32>} : memref<1x1x128xf32, #tpu.memory_space<vmem>>, vector<1x1x128xf32>,
    } else {
    }
    return
  }
  func.func @transform_0(%arg0: i32, %arg1: i32) -> (i32, i32, i32) {
    %c0_i32 = arith.constant 0 : i32
    %c0_i32_0 = arith.constant 0 : i32
    %c0_i32_1 = arith.constant 0 : i32
    return %arg0, %c0_i32, %c0_i32_0 : i32, i32, i32
  }
  func.func @transform_1(%arg0: i32, %arg1: i32) -> (i32, i32, i32) {
    %c0_i32 = arith.constant 0 : i32
    %c0_i32_0 = arith.constant 0 : i32
    return %arg0, %c0_i32, %arg1 : i32, i32, i32
  }
  func.func @transform_2(%arg0: i32, %arg1: i32) -> (i32, i32, i32) {
    %c0_i32 = arith.constant 0 : i32
    %c0_i32_0 = arith.constant 0 : i32
    %c0_i32_1 = arith.constant 0 : i32
    return %arg0, %c0_i32, %c0_i32_0 : i32, i32, i32
  }
}

</mosaic_0001>

<bundles_post_ra>
// kernel: tpu_custom_call.1
= control target key start
LH: loop header
LB: loop body
LE: loop exit
PB: predicated region body
PF: predicated region fallthrough
CT: control target
= control target key end

     0   :  { %vm32_vm0 = vcmask 23552   ;;  %v335_v7 = vmov 0   ;;  %s382_s0 = inlined_call_operand.vmem [shape: f32[2,16,3], index: 0, kind: input, shape index: {}]   ;;  %s383_s1 = inlined_call_operand.vmem [shape: f32[2,3,128], index: 1, kind: input, shape index: {}]   ;;  %s384_s2 = inlined_call_operand.hbm [shape: f32[1,1,128], index: 2, kind: output, shape index: {}]  }
   0x1   :  { %v292_v0 = vld [vmem:[%s382_s0 + $0x10] sm:$0xff]  ;;  %v293_v1 = vld [vmem:[%s382_s0 + $0x18] sm:$0xff]  ;;  %v27_v2 = vld [vmem:[%s382_s0] sm:$0xff]  ;;  %309 = vset.pattern.permute.xlu1 %v335_v7  ;;  %308 = vset.pattern.permute.xlu0 %v335_v7 }
   0x2   :  { %v133_v3 = vmul.f32 %v292_v0, %v292_v0  ;;  %v134_v4 = vmul.f32 %v293_v1, %v293_v1  ;;  %v30_v5 = vmul.f32 %v27_v2, %v27_v2  ;;  %v28_v6 = vld [vmem:[%s382_s0 + $0x8] sm:$0xff] }
   0x3   :  { %7 = vsyncpa [#allocation5], 0  ;;  %v31_v8 = vmul.f32 %v28_v6, %v28_v6  ;;  %v51_v13 = vmul.f32 -2.0, %v28_v6  ;;  %v151_v14 = vmul.f32 -2.0, %v292_v0  ;;  %v50_v15 = vmul.f32 -2.0, %v27_v2  ;;  %s339_s25 = smov [#allocation4]  }
   0x4   :  { %v135_v9 = vsel %vm32_vm0, %v133_v3, 0.0  ;;  %v33_v10 = vsel %vm32_vm0, %v30_v5, 0.0  ;;  %v138_v11 = vsel %vm32_vm0, %v134_v4, 0.0  ;;  %v152_v16 = vmul.f32 -2.0, %v293_v1  ;;  %v29_v19 = vld [vmem:[%s383_s1] sm:$0x7] }
   0x5   :  { %136 = vadd.xlane.f32.xlu1 %v135_v9  ;;  %34 = vadd.xlane.f32.xlu0 %v33_v10  ;;  %v36_v12 = vsel %vm32_vm0, %v31_v8, 0.0  ;;  %v336_v17 = vmov 2   ;;  %v337_v18 = vmov 1   ;;  %v39_v20 = vmul.f32 %v29_v19, %v29_v19  ;;  %v294_v25 = vld [vmem:[%s383_s1 + $0x4] sm:$0x7]  ;;  %s284_s26 = sshll.u32 %s339_s25, 4  ;;  %s285_s26 = int_to_ptr.vmem [resolvable:$true] %s284_s26 }
   0x6   :  { %vm40_vm1 = vcmask 1042432   ;;  %v22_v28 = vlaneseq  ;;  %v141_v29 = vmul.f32 %v294_v25, %v294_v25  ;;  %vm110_vm3 = vcmask 1040384   ;;  %s313_s27 = scalar_lea.vmem %s285_s26, 16  ;;  %s317_s28 = scalar_lea.vmem %s285_s26, 32 }
   0x7   :  { %v41_v21 = vsel %vm40_vm1, %v39_v20, 0.0  ;;  %vm241_vm4 = vcmask 7168   ;;  %p314_p0 = scmp.ne.s32.totalorder %s285_s26, %s313_s27  ;;  %p318_p1 = scmp.lt.s32.totalorder %s285_s26, %s285_s26 }
   0x8   :  { %v42_v22 = vrot.slane %v41_v21, 4  ;;  %v63_v33 = vshrl.u32 %v22_v28, 7  ;;  %v142_v34 = vsel %vm40_vm1, %v141_v29, 0.0  ;;  %p319_p2 = scmp.lt.s32.totalorder %s317_s28, %s313_s27 }
   0x9   :  { %139 = vadd.xlane.f32.xlu1 %v138_v11  ;;  %37 = vadd.xlane.f32.xlu0 %v36_v12  ;;  %v143_v38 = vrot.slane %v142_v34, 4 }
   0xa   :  { %v43_v24 = vadd.f32 %v42_v22, %v41_v21  ;;  %v64_v37 = vsub.s32 0, %v63_v33  ;;  %v96_v43 = vsub.s32 2, %v63_v33  ;;  %v80_v46 = vsub.s32 1, %v63_v33  ;;  %p320_p3 = por %p319_p2, %p318_p1 }
   0xb   :  { %v144_v44 = vadd.f32 %v143_v38, %v142_v34  ;;  %v23_v34 = vand.u32 127, %v22_v28  ;;  %v338_v28 = vmov 0.0  }
   0xc   :  { %v44_v27 = vrot.slane %v43_v24, 2  ;;  %v65_v42 = vrot.slane %v29_v19, %v64_v37  ;;  %v97_v50 = vrot.slane %v29_v19, %v96_v43  ;;  %v81_v53 = vrot.slane %v29_v19, %v80_v46  ;;  %16 = vst [vmem:[#allocation4] sm:$0x1] %v338_v28  ;;  %p321_p4 = pnand %p320_p3, %p314_p0 }
   0xd   :  { %v145_v51 = vrot.slane %v144_v44, 2  ;;  %v166_v1 = vrot.slane %v294_v25, %v64_v37  ;;  %v182_v6 = vrot.slane %v294_v25, %v80_v46  ;;  %v198_v9 = vrot.slane %v294_v25, %v96_v43 }
   0xe   :  { %v45_v32 = vadd.f32 %v44_v27, %v43_v24  ;;  %vm26_vm2 = vcmp.lt.s32.totalorder %v23_v34, 16 }
   0xf   :  { %v146_v58 = vadd.f32 %v145_v51, %v144_v44 }
  0x10   :  { %v46_v36 = vrot.slane %v45_v32, 1 }
  0x11   :  { %v147_v62 = vrot.slane %v146_v58, 1 }
  0x12   :  { %v47_v41 = vadd.f32 %v46_v36, %v45_v32 }
  0x13   :  { %v148_v3 = vadd.f32 %v147_v62, %v146_v58 }
  0x1a   :  { %59 = vperm.xlu1 %309, %v51_v13  }
  0x1e   :  { %155 = vperm.xlu1 %309, %v151_v14  }
  0x1f   :  { %54 = vperm.xlu0 %308, %v50_v15  }
  0x22   :  { %160 = vperm.xlu1 %309, %v152_v16  }
  0x23   :  { %312 = vset.pattern.permute.xlu0 %v336_v17 }
  0x24   :  { %91 = vperm.xlu0 %312, %v51_v13  }
  0x26   :  { %310 = vset.pattern.permute.xlu1 %v337_v18 }
  0x27   :  { %71 = vperm.xlu1 %310, %v50_v15  }
  0x2b   :  { %75 = vperm.xlu1 %310, %v51_v13  }
  0x2f   :  { %172 = vperm.xlu1 %310, %v151_v14  }
  0x33   :  { %176 = vperm.xlu1 %310, %v152_v16  }
  0x37   :  { %311 = vset.pattern.permute.xlu1 %v336_v17 }
  0x38   :  { %87 = vperm.xlu1 %311, %v50_v15  }
  0x3c   :  { %188 = vperm.xlu1 %311, %v151_v14  }
  0x40   :  { %192 = vperm.xlu1 %311, %v152_v16  }
  0x8e   :  { %v137_v23 = vpop.xlane.xlu1 %136  ;;  %v35_v30 = vpop.xlane.xlu0 %34 }
  0x8f   :  { %v48_v63 = vadd.f32 %v47_v41, %v35_v30  ;;  %v149_v10 = vadd.f32 %v148_v3, %v137_v23 }
  0x92   :  { %v140_v26 = vpop.xlane.xlu1 %139  ;;  %v38_v39 = vpop.xlane.xlu0 %37 }
  0x93   :  { %v49_v49 = vadd.f32 %v47_v41, %v38_v39  ;;  %v150_v17 = vadd.f32 %v148_v3, %v140_v26 }
  0x96   :  { %v60_v31 = vpop.permute.xlu1 %59 }
  0x97   :  { %v67_v48 = vmul.f32 %v65_v42, %v60_v31 }
  0x99   :  { %v69_v55 = vadd.f32 %v67_v48, %v49_v49 }
  0x9a   :  { %v156_v35 = vpop.permute.xlu1 %155  ;;  %v55_v45 = vpop.permute.xlu0 %54 }
  0x9b   :  { %v66_v0 = vmul.f32 %v65_v42, %v55_v45  ;;  %v167_v7 = vmul.f32 %v166_v1, %v156_v35 }
  0x9d   :  { %v68_v4 = vadd.f32 %v66_v0, %v48_v63  ;;  %v169_v14 = vadd.f32 %v167_v7, %v149_v10 }
  0x9e   :  { %v161_v40 = vpop.permute.xlu1 %160 }
  0x9f   :  { %v92_v52 = vpop.permute.xlu0 %91  ;;  %v168_v15 = vmul.f32 %v166_v1, %v161_v40 }
  0xa0   :  { %v99_v57 = vmul.f32 %v97_v50, %v92_v52 }
  0xa1   :  { %v170_v24 = vadd.f32 %v168_v15, %v150_v17 }
  0xa2   :  { %v72_v47 = vpop.permute.xlu1 %71 }
  0xa3   :  { %v82_v5 = vmul.f32 %v81_v53, %v72_v47 }
  0xa5   :  { %v84_v11 = vadd.f32 %v82_v5, %v68_v4 }
  0xa6   :  { %v76_v54 = vpop.permute.xlu1 %75 }
  0xa7   :  { %v83_v56 = vmul.f32 %v81_v53, %v76_v54 }
  0xa9   :  { %v85_v59 = vadd.f32 %v83_v56, %v69_v55 }
  0xaa   :  { %v173_v60 = vpop.permute.xlu1 %172 }
  0xab   :  { %v101_v61 = vadd.f32 %v99_v57, %v85_v59  ;;  %v183_v12 = vmul.f32 %v182_v6, %v173_v60 }
  0xad   :  { %239 = vmin.xlane.f32.xlu1 %v101_v61  ;;  %v185_v19 = vadd.f32 %v183_v12, %v169_v14 }
  0xae   :  { %v177_v2 = vpop.permute.xlu1 %176 }
  0xaf   :  { %v184_v20 = vmul.f32 %v182_v6, %v177_v2 }
  0xb1   :  { %v186_v31 = vadd.f32 %v184_v20, %v170_v24 }
  0xb3   :  { %v88_v8 = vpop.permute.xlu1 %87 }
  0xb4   :  { %v98_v13 = vmul.f32 %v97_v50, %v88_v8  ;;  %v228_v8 = vld [vmem:[#allocation4] sm:$0x1] }
  0xb6   :  { %v100_v16 = vadd.f32 %v98_v13, %v84_v11 }
  0xb7   :  { %v189_v18 = vpop.permute.xlu1 %188 }
  0xb8   :  { %v199_v21 = vmul.f32 %v198_v9, %v189_v18  ;;  %237 = vmin.xlane.f32.xlu0 %v100_v16  ;;  %v102_v22 = vmin.f32 %v100_v16, %v101_v61 }
  0xba   :  { %v103_v27 = vrot.slane %v102_v22, 4  ;;  %v201_v29 = vadd.f32 %v199_v21, %v185_v19 }
  0xbb   :  { %v193_v30 = vpop.permute.xlu1 %192 }
  0xbc   :  { %v104_v25 = vmin.f32 %v102_v22, %v103_v27  ;;  %v200_v23 = vmul.f32 %v198_v9, %v193_v30  ;;  %257 = vmin.xlane.f32.xlu0 %v201_v29 }
  0xbe   :  { %v202_v32 = vadd.f32 %v200_v23, %v186_v31  ;;  %v105_v33 = vrot.slane %v104_v25, 2 }
  0xc0   :  { %v203_v35 = vmin.f32 %v201_v29, %v202_v32  ;;  %259 = vmin.xlane.f32.xlu0 %v202_v32  ;;  %v106_v26 = vmin.f32 %v104_v25, %v105_v33 }
  0xc2   :  { %v204_v36 = vrot.slane %v203_v35, 4  ;;  %v107_v37 = vrot.slane %v106_v26, 1 }
  0xc4   :  { %v205_v38 = vmin.f32 %v203_v35, %v204_v36  ;;  %v108_v39 = vmin.f32 %v106_v26, %v107_v37 }
  0xc6   :  { %v109_v40 = vsel %vm26_vm2, %v108_v39, 0.0  ;;  %v206_v41 = vrot.slane %v205_v38, 2 }
  0xc7   :  { %v111_v42 = vsel %vm110_vm3, %v109_v40, 0.0 }
  0xc8   :  { %112 = vadd.xlane.f32.xlu1 %v111_v42  ;;  %v207_v43 = vmin.f32 %v205_v38, %v206_v41 }
  0xca   :  { %v208_v44 = vrot.slane %v207_v43, 1 }
  0xcc   :  { %v209_v45 = vmin.f32 %v207_v43, %v208_v44 }
  0xce   :  { %v210_v46 = vsel %vm26_vm2, %v209_v45, 0.0 }
  0xcf   :  { %v211_v47 = vsel %vm110_vm3, %v210_v46, 0.0 }
  0xd0   :  { %212 = vadd.xlane.f32.xlu0 %v211_v47 }
 0x136   :  { %v240_v48 = vpop.xlane.xlu1 %239 }
 0x137   :  { %v243_v50 = vsel %vm241_vm4, %v240_v48, 0.0 }
 0x141   :  { %v238_v49 = vpop.xlane.xlu0 %237 }
 0x142   :  { %v242_v51 = vsel %vm241_vm4, %v238_v49, 0.0 }
 0x143   :  { %v244_v52 = vadd.f32 %v243_v50, %v242_v51 }
 0x145   :  { %v258_v53 = vpop.xlane.xlu0 %257  ;;  %245 = vadd.xlane.f32.xlu1 %v244_v52 }
 0x146   :  { %v261_v55 = vsel %vm241_vm4, %v258_v53, 0.0 }
 0x149   :  { %v260_v54 = vpop.xlane.xlu0 %259 }
 0x14a   :  { %v262_v56 = vsel %vm241_vm4, %v260_v54, 0.0 }
 0x14b   :  { %v263_v57 = vadd.f32 %v262_v56, %v261_v55 }
 0x14d   :  { %264 = vadd.xlane.f32.xlu0 %v263_v57 }
 0x151   :  { %v113_v58 = vpop.xlane.xlu1 %112 }
 0x152   :  { %v114_v59 = vrot.slane %v113_v58, 4 }
 0x154   :  { %v115_v60 = vadd.f32 %v114_v59, %v113_v58 }
 0x156   :  { %v116_v61 = vrot.slane %v115_v60, 2 }
 0x158   :  { %v117_v62 = vadd.f32 %v116_v61, %v115_v60 }
 0x159   :  { %v213_v63 = vpop.xlane.xlu0 %212 }
 0x15a   :  { %v214_v0 = vrot.slane %v213_v63, 4  ;;  %v118_v1 = vrot.slane %v117_v62, 1 }
 0x15c   :  { %v215_v2 = vadd.f32 %v214_v0, %v213_v63  ;;  %v119_v3 = vadd.f32 %v118_v1, %v117_v62 }
 0x15e   :  { %v216_v4 = vrot.slane %v215_v2, 2  ;;  %295 = vpush %v119_v3 }
 0x160   :  { %v217_v5 = vadd.f32 %v216_v4, %v215_v2 }
 0x162   :  { %v218_v6 = vrot.slane %v217_v5, 1 }
 0x164   :  { %v219_v7 = vadd.f32 %v218_v6, %v217_v5 }
 0x166   :  { %297 = vpush %v219_v7 }
 0x18f   :  { %s296_s1 = spop %295 }
 0x197   :  { %s298_s20 = spop %297 }
 0x198   :  { %s221_s21 = sadd.f32 %s298_s20, %s296_s1 }
 0x19a   :  { %v229_v9 = vstv %s221_s21 }
 0x19b   :  { %v230_v10 = vadd.f32 %v229_v9, %v228_v8 }
 0x19d   :  { %231 = vst [vmem:[#allocation4] sm:$0x1] %v230_v10 }
 0x1a4   :  { %v274_v29 = vld [vmem:[#allocation4] sm:$0x1] }
 0x1ce   :  { %v246_v11 = vpop.xlane.xlu1 %245 }
 0x1cf   :  { %v247_v12 = vrot.slane %v246_v11, 4 }
 0x1d1   :  { %v248_v13 = vadd.f32 %v247_v12, %v246_v11 }
 0x1d3   :  { %v249_v14 = vrot.slane %v248_v13, 2 }
 0x1d5   :  { %v250_v15 = vadd.f32 %v249_v14, %v248_v13 }
 0x1d6   :  { %v265_v16 = vpop.xlane.xlu0 %264 }
 0x1d7   :  { %v266_v17 = vrot.slane %v265_v16, 4  ;;  %v251_v18 = vrot.slane %v250_v15, 1 }
 0x1d9   :  { %v267_v19 = vadd.f32 %v266_v17, %v265_v16  ;;  %v252_v20 = vadd.f32 %v251_v18, %v250_v15 }
 0x1db   :  { %v268_v21 = vrot.slane %v267_v19, 2  ;;  %299 = vpush %v252_v20 }
 0x1dd   :  { %v269_v22 = vadd.f32 %v268_v21, %v267_v19 }
 0x1df   :  { %v270_v24 = vrot.slane %v269_v22, 1 }
 0x1e1   :  { %v271_v27 = vadd.f32 %v270_v24, %v269_v22 }
 0x1e3   :  { %301 = vpush %v271_v27 }
 0x20c   :  { %s300_s22 = spop %299 }
 0x214   :  { %s302_s23 = spop %301 }
 0x215   :  { %s273_s24 = sadd.f32 %s302_s23, %s300_s22 }
 0x217   :  { %v275_v30 = vstv %s273_s24 }
 0x218   :  { %v276_v31 = vadd.f32 %v275_v30, %v274_v29 }
 0x21a   :  { %277 = vst [vmem:[#allocation4] sm:$0x1] %v276_v31 }
 0x21b   :  { %324 = shalt.err (!%p321_p4)
}
 0x21c   :  { %287 = dma.vmem_to_hbm [thread:$0]  %s285_s26, 16, %s384_s2, [#allocation5]  }
 0x21d   :  { %333 = dma.done.wait [#allocation5], 16  }
 0x21e   :  { %334 = vsyncadd [#allocation5], 4294967280 }
 0x21f   :  { %291 = vsyncpa [#allocation5], 1 }

</bundles_post_ra>
